<compile_context>
chip_gen: v5e
topology: v5e:2x2
jax: 0.10.0
libtpu: 0.0.40
codegen_flags: <defaults>
</compile_context>

<pallas_src>
import math

import jax
import jax.numpy as jnp
from jax.experimental import pallas as pl
from jax.experimental.pallas import tpu as pltpu

MXU_DTYPE = jnp.bfloat16          # matmul operand dtype (v6e/v7x feedback)
_VMEM_LIMIT = 32 * 1024 * 1024    # safe on v5e/v6e/v7x scoped-VMEM budgets


def _round_up(x, m):
    return (x + m - 1) // m * m


def _pick_hw_tile(hw, max_tile=2048):
    """Largest lane-aligned HW tile that divides HW (capped so the
    double-buffered f32 working set stays well under v7x / v5e scoped VMEM)."""
    for t in (2048, 1024, 512, 256, 128):
        if t <= max_tile and hw % t == 0:
            return t
    return hw   # tiny / odd HW: single full-width block


# --------------------------------------------------------------------------
# Kernel 1: 1x1 conv (channel-major) + per-channel GroupNorm partial stats
#   y[:, tile] = W^T @ x[:, tile] + b        (bf16 MXU operands, f32 acc)
#   sum_c  += sum_lanes(y)                   (resident accumulator)
#   sumsq_c+= sum_lanes(y*y)
# --------------------------------------------------------------------------
def _conv_stats_kernel(x_ref, w_ref, b_ref, y_ref, sum_ref, sq_ref):
    t = pl.program_id(0)
    y = jnp.dot(w_ref[...], x_ref[...],
                preferred_element_type=jnp.float32) + b_ref[...]     # [H, T]
    y_ref[...] = y

    s = jnp.sum(y, axis=1, keepdims=True)                            # [H, 1]
    ss = jnp.sum(y * y, axis=1, keepdims=True)                       # [H, 1]

    @pl.when(t == 0)
    def _():
        sum_ref[...] = jnp.zeros_like(sum_ref)
        sq_ref[...] = jnp.zeros_like(sq_ref)

    sum_ref[...] += s
    sq_ref[...] += ss


# --------------------------------------------------------------------------
# Kernel 2: GroupNorm apply, folded into per-channel scale/shift
#   out = y * scale + shift      (scale = gamma*inv, shift = beta - mean*scale)
# --------------------------------------------------------------------------
def _gn_apply_kernel(y_ref, aff_ref, o_ref):
    y = y_ref[...]                                                   # [H, T]
    scale = aff_ref[:, 0:1]                                          # [H, 1]
    shift = aff_ref[:, 1:2]                                          # [H, 1]
    o_ref[...] = y * scale + shift


def input_proj(x_nchw, w_hc, b, gamma, beta, num_groups=32, eps=1e-5):
    """Conv2d(Cin, hidden, kernel_size=1) + GroupNorm(num_groups, hidden).

    x_nchw: [1, Cin, H, W]   w_hc: [hidden, Cin] (PyTorch conv weight squeezed)
    Returns [1, hidden, H, W] float32, with no NCHW<->NHWC transposes.
    """
    B, Cin, H, W = x_nchw.shape
    assert B == 1, "MOMOT asserts a single frame per forward"
    hidden = w_hc.shape[0]
    HW = H * W
    T = _pick_hw_tile(HW)
    nt = HW // T

    x_cm = x_nchw.reshape(Cin, HW).astype(MXU_DTYPE)      # natural NCHW flatten
    wT = w_hc.astype(MXU_DTYPE)                           # [hidden, Cin]
    b2d = b.reshape(hidden, 1).astype(jnp.float32)

    y, sum_c, sumsq_c = pl.pallas_call(
        _conv_stats_kernel,
        out_shape=(jax.ShapeDtypeStruct((hidden, HW), jnp.float32),
                   jax.ShapeDtypeStruct((hidden, 1), jnp.float32),
                   jax.ShapeDtypeStruct((hidden, 1), jnp.float32)),
        grid=(nt,),
        in_specs=[
            pl.BlockSpec((Cin, T), lambda t: (0, t)),
            pl.BlockSpec((hidden, Cin), lambda t: (0, 0)),
            pl.BlockSpec((hidden, 1), lambda t: (0, 0)),
        ],
        out_specs=(pl.BlockSpec((hidden, T), lambda t: (0, t)),
                   pl.BlockSpec((hidden, 1), lambda t: (0, 0)),   # resident
                   pl.BlockSpec((hidden, 1), lambda t: (0, 0))),  # resident
        compiler_params=pltpu.CompilerParams(
            dimension_semantics=("arbitrary",),     # stats accumulation
            vmem_limit_bytes=_VMEM_LIMIT),
    )(x_cm, wT, b2d)

    # Tiny per-group reduction + fold into per-channel scale/shift ([hidden]).
    cpg = hidden // num_groups
    n = float(HW * cpg)
    sum_g = sum_c[:, 0].reshape(num_groups, cpg).sum(axis=1)
    sumsq_g = sumsq_c[:, 0].reshape(num_groups, cpg).sum(axis=1)
    mean_g = sum_g / n
    # TODO(synk): one-pass E[x^2]-E[x]^2 can cancel for very-large-mean real
    # backbone features; a second stats sweep over y with the mean subtracted
    # (two-pass) would be exact.  Clamp keeps var >= 0.
    var_g = jnp.maximum(sumsq_g / n - mean_g * mean_g, 0.0)
    inv_g = jax.lax.rsqrt(var_g + eps)
    mean_ch = jnp.repeat(mean_g, cpg)
    inv_ch = jnp.repeat(inv_g, cpg)
    scale = gamma * inv_ch
    shift = beta - mean_ch * scale
    affine = jnp.stack([scale, shift], axis=1).astype(jnp.float32)   # [hidden, 2]

    out = pl.pallas_call(
        _gn_apply_kernel,
        out_shape=jax.ShapeDtypeStruct((hidden, HW), jnp.float32),
        grid=(nt,),
        in_specs=[pl.BlockSpec((hidden, T), lambda t: (0, t)),
                  pl.BlockSpec((hidden, 2), lambda t: (0, 0))],
        out_specs=pl.BlockSpec((hidden, T), lambda t: (0, t)),
        compiler_params=pltpu.CompilerParams(
            dimension_semantics=("parallel",),       # megacore split on v7x
            vmem_limit_bytes=_VMEM_LIMIT),
    )(y, affine)

    return out.reshape(1, hidden, H, W)               # NCHW, still no transpose


# --------------------------------------------------------------------------
# Kernel 3: fused prediction heads for all decoder levels at once
#   z    = h @ [w1 | wc_pad] + [b1 | bc_pad]     (class head fused into MLP L1)
#   cls  = z[:, D:]
#   t    = relu(z[:, :D]);  t = relu(t @ w2 + b2);  t = t @ w3_pad + b3_pad
#   t[:, :2] += inverse_sigmoid(reference);  box = sigmoid(t)
#   out  = [cls | box]   (single packed lane-dense slab)
# --------------------------------------------------------------------------
def _heads_kernel(hs_ref, ref_ref, wa_ref, ba_ref, w23_ref, b23_ref, out_ref):
    h = hs_ref[...]                                                  # bf16 [R, D]
    D = h.shape[1]

    z = jnp.dot(h, wa_ref[...], preferred_element_type=jnp.float32) + ba_ref[...]
    cls_block = z[:, D:]                                             # [R, CPAD]

    t = jnp.maximum(z[:, :D], 0.0)
    t = jnp.dot(t.astype(hs_ref.dtype), w23_ref[0],
                preferred_element_type=jnp.float32) + b23_ref[0:1, :]
    t = jnp.maximum(t, 0.0)
    t = jnp.dot(t.astype(hs_ref.dtype), w23_ref[1],
                preferred_element_type=jnp.float32) + b23_ref[1:2, :]  # [R, D]

    # inverse_sigmoid(reference) added to the first two box coords only
    r = jnp.clip(ref_ref[...], 0.0, 1.0)                             # [R, D]
    inv_sig = jnp.log(jnp.maximum(r, 1e-5)) - jnp.log(jnp.maximum(1.0 - r, 1e-5))
    col = jax.lax.broadcasted_iota(jnp.int32, t.shape, 1)
    t = t + jnp.where(col < 2, inv_sig, 0.0)
    box_block = jax.nn.sigmoid(t)                                    # [R, D]

    cpad = cls_block.shape[1]
    out_ref[:, :cpad] = cls_block                                    # aligned stores
    out_ref[:, cpad:] = box_block


def prediction_heads(hs, refs, params):
    """hs: [L, Q, D]  refs: [L, Q, 2]  ->  cls [L, Q, C], coord [L, Q, 4]."""
    L, Q, D = hs.shape
    C = params["wc"].shape[1]
    CPAD = _round_up(C, 128)
    R = L * Q
    if R >= 256:
        row_tile = 256
        Rpad = _round_up(R, row_tile)
    else:
        Rpad = _round_up(R, 8)
        row_tile = Rpad
    nt = Rpad // row_tile

    hs_p = jnp.pad(hs.reshape(R, D), ((0, Rpad - R), (0, 0))).astype(MXU_DTYPE)
    refs_p = jnp.pad(refs.reshape(R, refs.shape[-1]),
                     ((0, Rpad - R), (0, D - refs.shape[-1]))).astype(jnp.float32)

    # Fused / packed weight & bias operands (constant-folded under jit).
    wc_pad = jnp.pad(params["wc"], ((0, 0), (0, CPAD - C)))
    wa = jnp.concatenate([params["w1"], wc_pad], axis=1).astype(MXU_DTYPE)   # [D, D+CPAD]
    ba = jnp.concatenate([params["b1"],
                          jnp.pad(params["bc"], (0, CPAD - C))])[None, :].astype(jnp.float32)
    w3_pad = jnp.pad(params["w3"], ((0, 0), (0, D - 4)))
    w23 = jnp.stack([params["w2"], w3_pad]).astype(MXU_DTYPE)                # [2, D, D]
    b23 = jnp.stack([params["b2"],
                     jnp.pad(params["b3"], (0, D - 4))]).astype(jnp.float32)  # [2, D]

    packed = pl.pallas_call(
        _heads_kernel,
        out_shape=jax.ShapeDtypeStruct((Rpad, CPAD + D), jnp.float32),
        grid=(nt,),
        in_specs=[
            pl.BlockSpec((row_tile, D), lambda r: (r, 0)),
            pl.BlockSpec((row_tile, D), lambda r: (r, 0)),
            pl.BlockSpec((D, D + CPAD), lambda r: (0, 0)),
            pl.BlockSpec((1, D + CPAD), lambda r: (0, 0)),
            pl.BlockSpec((2, D, D), lambda r: (0, 0, 0)),
            pl.BlockSpec((2, D), lambda r: (0, 0)),
        ],
        out_specs=pl.BlockSpec((row_tile, CPAD + D), lambda r: (r, 0)),
        compiler_params=pltpu.CompilerParams(
            dimension_semantics=("parallel",)),
    )(hs_p, refs_p, wa, ba, w23, b23)

    cls = packed[:R, :C].reshape(L, Q, C)
    coord = packed[:R, CPAD:CPAD + 4].reshape(L, Q, 4)
    return cls, coord


# --------------------------------------------------------------------------
# Deterministic parameter init (shapes match MOMOT.__init__, single feature
# level, no box refine, not two-stage).
# --------------------------------------------------------------------------
def init_params(key, cfg):
    D, Cin, C = cfg["hidden_dim"], cfg["in_channels"], cfg["num_classes"]
    ks = jax.random.split(key, 6)
    prior_prob = 0.01
    bias_value = -math.log((1 - prior_prob) / prior_prob)
    return {
        # input_proj[0]: Conv2d(Cin, D, 1) + GroupNorm(32, D)
        "proj_w": 0.1 * jax.random.normal(ks[0], (D, Cin), jnp.float32),
        "proj_b": jnp.zeros((D,), jnp.float32),
        "gn_gamma": jnp.ones((D,), jnp.float32),
        "gn_beta": jnp.zeros((D,), jnp.float32),
        # class_embed = Linear(D, C), bias = bias_value
        "wc": 0.05 * jax.random.normal(ks[1], (D, C), jnp.float32),
        "bc": jnp.full((C,), bias_value, jnp.float32),
        # bbox_embed = MLP(D, D, 4, 3); last layer weight=0, bias=[0,0,-2,-2]
        "w1": 0.05 * jax.random.normal(ks[2], (D, D), jnp.float32),
        "b1": jnp.zeros((D,), jnp.float32),
        "w2": 0.05 * jax.random.normal(ks[3], (D, D), jnp.float32),
        "b2": jnp.zeros((D,), jnp.float32),
        "w3": jnp.zeros((D, 4), jnp.float32),
        "b3": jnp.array([0.0, 0.0, -2.0, -2.0], jnp.float32),
        # query_embed = Embedding(num_queries, 2*D)
        "query_embed": 0.5 * jax.random.normal(ks[4], (cfg["num_queries"], 2 * D),
                                               jnp.float32),
        # track_instances (track_embed / boxes) as produced by generate_empty_tracks
        "track_embed": 0.1 * jax.random.normal(ks[5], (cfg["num_tracks"], D),
                                               jnp.float32),
        "track_boxes": jnp.zeros((cfg["num_tracks"], 4), jnp.float32),
    }


# --------------------------------------------------------------------------
# MOMOT._forward_single_image (kernel-backed, batch dim of 1)
# --------------------------------------------------------------------------
def momot_forward_single_image(frame_feat_nchw, params, cfg, hs_key):
    # input_proj (Pallas kernels 1 + 2)
    src = input_proj(frame_feat_nchw, params["proj_w"], params["proj_b"],
                     params["gn_gamma"], params["gn_beta"],
                     num_groups=cfg["num_groups"])

    # TODO(synk): deformable transformer stub -- deterministic synthetic decoder
    # states tied to the projected features, query embeddings and track embeds.
    B, D, H, W = src.shape
    L = cfg["num_decoder_layers"]
    nq, ntk = cfg["num_queries"], cfg["num_tracks"]
    Qt = nq + ntk
    ctx = jnp.mean(src.reshape(D, H * W), axis=-1)                     # [D]
    query_part = jnp.concatenate([params["query_embed"][:, :D],
                                  params["track_embed"]], axis=0)      # [Qt, D]
    hs = jnp.tanh(0.1 * jax.random.normal(hs_key, (L, Qt, D), jnp.float32)
                  + 0.05 * ctx[None, None, :] + 0.1 * query_part[None])

    init_reference = jax.nn.sigmoid(params["query_embed"][:, D:D + 2])  # [nq, 2]
    track_reference = params["track_boxes"][:, :2]                      # [ntk, 2]
    ref = jnp.concatenate([init_reference, track_reference], axis=0)    # [Qt, 2]
    refs = jnp.broadcast_to(ref[None], (L, Qt, 2)) + 0.0                # no box refine

    # prediction heads (Pallas kernel 3), shared weights across levels
    cls, coord = prediction_heads(hs, refs, params)

    frame_res = {
        "pred_det_logits": cls[-1, :nq],
        "pred_det_boxes": coord[-1, :nq],
        "hs_det": hs[-1, :nq],
        "pred_track_logits": cls[-1, nq:],
        "pred_track_boxes": coord[-1, nq:],
        "hs_track": hs[-1, nq:],
        "query_embed": params["query_embed"][:, :D],
    }
    return frame_res, src, hs, refs, cls, coord


# --------------------------------------------------------------------------
# Pure-JAX references for correctness checking (same bf16 MXU operand casts)
# --------------------------------------------------------------------------
def _mxu_dot(a, b):
    return jnp.dot(a.astype(MXU_DTYPE), b.astype(MXU_DTYPE),
                   preferred_element_type=jnp.float32)


def input_proj_ref(x_nchw, w_hc, b, gamma, beta, num_groups=32, eps=1e-5):
    B, Cin, H, W = x_nchw.shape
    hidden = w_hc.shape[0]
    x_cm = x_nchw.reshape(Cin, H * W)
    y = _mxu_dot(w_hc, x_cm) + b[:, None]                              # [hidden, HW]
    yg = y.reshape(num_groups, (hidden // num_groups) * H * W)
    mean = yg.mean(axis=1, keepdims=True)
    var = ((yg - mean) ** 2).mean(axis=1, keepdims=True)
    yn = ((yg - mean) * jax.lax.rsqrt(var + eps)).reshape(hidden, H * W)
    out = yn * gamma[:, None] + beta[:, None]
    return out.reshape(1, hidden, H, W)


def heads_ref(hs, refs, params):
    def inv_sig(x, eps=1e-5):
        x = jnp.clip(x, 0.0, 1.0)
        return jnp.log(jnp.maximum(x, eps)) - jnp.log(jnp.maximum(1.0 - x, eps))
    cls = _mxu_dot(hs, params["wc"]) + params["bc"]
    t = jax.nn.relu(_mxu_dot(hs, params["w1"]) + params["b1"])
    t = jax.nn.relu(_mxu_dot(t, params["w2"]) + params["b2"])
    t = _mxu_dot(t, params["w3"]) + params["b3"]
    t = t.at[..., :2].add(inv_sig(refs))
    return cls, jax.nn.sigmoid(t)


if __name__ == "__main__":
    cfg = dict(hidden_dim=128, in_channels=16, num_classes=4, num_queries=8,
               num_tracks=4, num_decoder_layers=3, num_groups=32,
               feat_h=16, feat_w=48)     # HW=768 -> 3 grid tiles of 256
    key = jax.random.PRNGKey(0)
    k_feat, k_param, k_hs = jax.random.split(key, 3)
    params = init_params(k_param, cfg)
    frame_feat = jax.random.normal(
        k_feat, (1, cfg["in_channels"], cfg["feat_h"], cfg["feat_w"]), jnp.float32)

    frame_res, src, hs, refs, cls, coord = momot_forward_single_image(
        frame_feat, params, cfg, k_hs)
    jax.block_until_ready((frame_res, src, cls, coord))

    # correctness checks vs pure-JAX references
    src_r = input_proj_ref(frame_feat, params["proj_w"], params["proj_b"],
                           params["gn_gamma"], params["gn_beta"],
                           num_groups=cfg["num_groups"])
    cls_r, coord_r = heads_ref(hs, refs, params)
    assert jnp.allclose(src, src_r, atol=2e-3, rtol=1e-2), "input_proj mismatch"
    assert jnp.allclose(cls, cls_r, atol=2e-3, rtol=1e-2), "class head mismatch"
    assert jnp.allclose(coord, coord_r, atol=2e-3, rtol=1e-2), "bbox head mismatch"
    assert frame_res["pred_det_logits"].shape == (cfg["num_queries"], cfg["num_classes"])
    assert frame_res["pred_track_boxes"].shape == (cfg["num_tracks"], 4)

    print("KERNEL_OK")
</pallas_src>

<mosaic_0001>
module attributes {stable_mosaic.version = 11 : i64} {
  func.func @_conv_stats_kernel(%arg0: i32, %arg1: memref<16x256xbf16, #tpu.memory_space<vmem>>, %arg2: memref<128x16xbf16, #tpu.memory_space<vmem>>, %arg3: memref<128x1xf32, #tpu.memory_space<vmem>>, %arg4: memref<128x256xf32, #tpu.memory_space<vmem>>, %arg5: memref<128x1xf32, #tpu.memory_space<vmem>>, %arg6: memref<128x1xf32, #tpu.memory_space<vmem>>) attributes {dimension_semantics = [#tpu.dimension_semantics<arbitrary>], iteration_bounds = array<i64: 3>, scalar_prefetch = 0 : i64, scratch_operands = 0 : i64, tpu.core_type = #tpu.core_type<tc>, window_params = [{transform_indices = @transform_0, window_bounds = array<i64: 16, 256>}, {pipeline_mode = #tpu.pipeline_mode<synchronous>, transform_indices = @transform_1, window_bounds = array<i64: 128, 16>}, {pipeline_mode = #tpu.pipeline_mode<synchronous>, transform_indices = @transform_2, window_bounds = array<i64: 128, 1>}, {transform_indices = @transform_3, window_bounds = array<i64: 128, 256>}, {pipeline_mode = #tpu.pipeline_mode<synchronous>, transform_indices = @transform_4, window_bounds = array<i64: 128, 1>}, {pipeline_mode = #tpu.pipeline_mode<synchronous>, transform_indices = @transform_5, window_bounds = array<i64: 128, 1>}]} {
    %c0 = arith.constant 0 : index
    %c0_0 = arith.constant 0 : index
    %0 = vector.load %arg2[%c0, %c0_0] : memref<128x16xbf16, #tpu.memory_space<vmem>>, vector<128x16xbf16>
    %c0_1 = arith.constant 0 : index
    %c0_2 = arith.constant 0 : index
    %1 = vector.load %arg1[%c0_1, %c0_2] : memref<16x256xbf16, #tpu.memory_space<vmem>>, vector<16x256xbf16>
    %cst = arith.constant dense<0.000000e+00> : vector<128x256xf32>
    %2 = tpu.matmul %0, %1, %cst {dimension_numbers = #tpu.dot_dimension_numbers<[1], [0], [0], [1], [0, 0, 1, 1], [], []>} : vector<128x16xbf16>, vector<16x256xbf16>, vector<128x256xf32> -> vector<128x256xf32>
    %c0_3 = arith.constant 0 : index
    %c0_4 = arith.constant 0 : index
    %3 = vector.load %arg3[%c0_3, %c0_4] : memref<128x1xf32, #tpu.memory_space<vmem>>, vector<128x1xf32>
    %4 = vector.broadcast %3 : vector<128x1xf32> to vector<128x256xf32>
    %5 = arith.addf %2, %4 : vector<128x256xf32>
    %c0_5 = arith.constant 0 : index
    %c0_6 = arith.constant 0 : index
    %6 = vector.load %arg4[%c0_5, %c0_6] : memref<128x256xf32, #tpu.memory_space<vmem>>, vector<128x256xf32>
    tpu.vector_store %arg4[%c0_5, %c0_6], %5 {strides = array<i32>} : memref<128x256xf32, #tpu.memory_space<vmem>>, vector<128x256xf32>,
    %cst_7 = arith.constant dense<0.000000e+00> : vector<128xf32>
    %7 = vector.multi_reduction <add>, %5, %cst_7 [1] : vector<128x256xf32> to vector<128xf32>
    %8 = vector.shape_cast %7 : vector<128xf32> to vector<128x1xf32>
    %9 = arith.mulf %5, %5 : vector<128x256xf32>
    %cst_8 = arith.constant dense<0.000000e+00> : vector<128xf32>
    %10 = vector.multi_reduction <add>, %9, %cst_8 [1] : vector<128x256xf32> to vector<128xf32>
    %11 = vector.shape_cast %10 : vector<128xf32> to vector<128x1xf32>
    %c0_i32 = arith.constant 0 : i32
    %12 = arith.cmpi eq, %arg0, %c0_i32 : i32
    %13 = arith.extui %12 : i1 to i32
    %c0_i32_9 = arith.constant 0 : i32
    %14 = arith.cmpi ne, %13, %c0_i32_9 : i32
    scf.if %14 {
      %cst_18 = arith.constant 0.000000e+00 : f32
      %21 = vector.broadcast %cst_18 : f32 to vector<128x1xf32>
      %c0_19 = arith.constant 0 : index
      %c0_20 = arith.constant 0 : index
      %22 = vector.load %arg5[%c0_19, %c0_20] : memref<128x1xf32, #tpu.memory_space<vmem>>, vector<128x1xf32>
      tpu.vector_store %arg5[%c0_19, %c0_20], %21 {strides = array<i32>} : memref<128x1xf32, #tpu.memory_space<vmem>>, vector<128x1xf32>,
      %cst_21 = arith.constant 0.000000e+00 : f32
      %23 = vector.broadcast %cst_21 : f32 to vector<128x1xf32>
      %c0_22 = arith.constant 0 : index
      %c0_23 = arith.constant 0 : index
      %24 = vector.load %arg6[%c0_22, %c0_23] : memref<128x1xf32, #tpu.memory_space<vmem>>, vector<128x1xf32>
      tpu.vector_store %arg6[%c0_22, %c0_23], %23 {strides = array<i32>} : memref<128x1xf32, #tpu.memory_space<vmem>>, vector<128x1xf32>,
    } else {
    }
    %c0_10 = arith.constant 0 : index
    %c0_11 = arith.constant 0 : index
    %15 = vector.load %arg5[%c0_10, %c0_11] : memref<128x1xf32, #tpu.memory_space<vmem>>, vector<128x1xf32>
    %16 = arith.addf %15, %8 : vector<128x1xf32>
    %c0_12 = arith.constant 0 : index
    %c0_13 = arith.constant 0 : index
    %17 = vector.load %arg5[%c0_12, %c0_13] : memref<128x1xf32, #tpu.memory_space<vmem>>, vector<128x1xf32>
    tpu.vector_store %arg5[%c0_12, %c0_13], %16 {strides = array<i32>} : memref<128x1xf32, #tpu.memory_space<vmem>>, vector<128x1xf32>,
    %c0_14 = arith.constant 0 : index
    %c0_15 = arith.constant 0 : index
    %18 = vector.load %arg6[%c0_14, %c0_15] : memref<128x1xf32, #tpu.memory_space<vmem>>, vector<128x1xf32>
    %19 = arith.addf %18, %11 : vector<128x1xf32>
    %c0_16 = arith.constant 0 : index
    %c0_17 = arith.constant 0 : index
    %20 = vector.load %arg6[%c0_16, %c0_17] : memref<128x1xf32, #tpu.memory_space<vmem>>, vector<128x1xf32>
    tpu.vector_store %arg6[%c0_16, %c0_17], %19 {strides = array<i32>} : memref<128x1xf32, #tpu.memory_space<vmem>>, vector<128x1xf32>,
    return
  }
  func.func @transform_0(%arg0: i32) -> (i32, i32) {
    %c0_i32 = arith.constant 0 : i32
    %c0_i32_0 = arith.constant 0 : i32
    return %c0_i32, %arg0 : i32, i32
  }
  func.func @transform_1(%arg0: i32) -> (i32, i32) {
    %c0_i32 = arith.constant 0 : i32
    %c0_i32_0 = arith.constant 0 : i32
    %c0_i32_1 = arith.constant 0 : i32
    return %c0_i32, %c0_i32_0 : i32, i32
  }
  func.func @transform_2(%arg0: i32) -> (i32, i32) {
    %c0_i32 = arith.constant 0 : i32
    %c0_i32_0 = arith.constant 0 : i32
    %c0_i32_1 = arith.constant 0 : i32
    return %c0_i32, %c0_i32_0 : i32, i32
  }
  func.func @transform_3(%arg0: i32) -> (i32, i32) {
    %c0_i32 = arith.constant 0 : i32
    %c0_i32_0 = arith.constant 0 : i32
    return %c0_i32, %arg0 : i32, i32
  }
  func.func @transform_4(%arg0: i32) -> (i32, i32) {
    %c0_i32 = arith.constant 0 : i32
    %c0_i32_0 = arith.constant 0 : i32
    %c0_i32_1 = arith.constant 0 : i32
    return %c0_i32, %c0_i32_0 : i32, i32
  }
  func.func @transform_5(%arg0: i32) -> (i32, i32) {
    %c0_i32 = arith.constant 0 : i32
    %c0_i32_0 = arith.constant 0 : i32
    %c0_i32_1 = arith.constant 0 : i32
    return %c0_i32, %c0_i32_0 : i32, i32
  }
}

</mosaic_0001>

<bundles_post_ra>
// kernel: tpu_custom_call.1
= control target key start
LH: loop header
LB: loop body
LE: loop exit
PB: predicated region body
PF: predicated region fallthrough
CT: control target
= control target key end

     0   :  { %11 = vsyncpa [#allocation4], 0  ;;  %s1871_s0 = inlined_call_operand.vmem [shape: bf16[16,768], index: 0, kind: input, shape index: {}]   ;;  %s1872_s1 = inlined_call_operand.vmem [shape: bf16[128,16], index: 1, kind: input, shape index: {}]   ;;  %s1873_s2 = inlined_call_operand.vmem [shape: f32[128,1], index: 2, kind: input, shape index: {}]   ;;  %s1874_s3 = inlined_call_operand.hbm [shape: f32[128,768], index: 3, kind: output, shape index: {0}]   ;;  %s1875_s4 = inlined_call_operand.vmem [shape: f32[128,1], index: 4, kind: output, shape index: {1}]   ;;  %s1876_s5 = inlined_call_operand.vmem [shape: f32[128,1], index: 5, kind: output, shape index: {2}]  }
   0x1   :  { %13 = vsyncpa [#allocation4 + $0x1], 0  ;;  %s1169_s18 = smov 0   ;;  %s1171_s19 = smov 0  }
   0x2   :  { %s1173_s20 = smov 0   ;;  %s1175_s21 = smov 0  }
   0x3 LB: > { %s1190_s22 = sadd.s32 4294967295, %s1132_s21   ;;  %s938_s23 = sadd.s32 4294967294, %s1132_s21   ;;  %s1132_s21 = sphi %s1175_s21, %s1882_s21   ;;  %s1128_s20 = sphi %s1173_s20, %s1881_s20   ;;  %s1124_s19 = sphi %s1171_s19, %s1880_s19   ;;  %s1120_s18 = sphi %s1169_s18, %s1879_s18  }
   0x4   : > { %s1194_s24 = sadd.s32 1, %s1132_s21   ;;  %s26_s25 = sadd.s32 1, %s1128_s20 }
   0x5   : > { %s23_s26 = ssub.s32 %s1132_s21, %s1194_s24  ;;  %p33_p0 = scmp.ne.s32.totalorder %s1128_s20, %s1124_s19 }
   0x6   : > { %p24_p1 = scmp.eq.s32.totalorder %s23_s26, 0  ;;  %p34_p2 = scmp.eq.s32.totalorder %s1132_s21, 0 }
   0x7   : > { %p105_p3 = scmp.eq.s32.totalorder %s1190_s22, 2  ;;  %p110_p4 = scmp.ne.s32.totalorder %s1124_s19, %s1120_s18 }
   0x8   : > { %s1206_s27 = scalar_select %p24_p1, %s1128_s20, %s26_s25  }
   0x9   : > { %p35_p5 = por %p34_p2, %p33_p0  ;;  %p1208_p6 = por %p105_p3, %p33_p0 }
   0xa   : > { %p111_p7 = scmp.eq.s32.totalorder %s938_s23, 2  ;;  %p940_p9 = scmp.ge.s32.totalorder %s1132_s21, 3 }
   0xc   : > { %p1212_p8 = por %p111_p7, %p110_p4  ;;  %175 = sbr.rel (%p940_p9) target bundleno = 23 (0x17), region = 24 }
  0x11   : > { %178 = sbr.rel (!%p35_p5) target bundleno = 23 (0x17), region = 28  ;;  %s180_s30 = sand.u32 (%p35_p5), 1, %s1128_s20  }
  0x12   : > { %s1009_s6 = sshll.u32 (%p35_p5), %s1132_s21, 3  ;;  %s941_s7 = sshll.u32 (%p35_p5), %s180_s30, 4 }
  0x13   : > { %s185_s10 = scalar_lea.vmem (%p35_p5), %s1871_s0, %s1009_s6  ;;  %s182_s11 = scalar_lea.vmem (%p35_p5), [#allocation2], %s941_s7 }
  0x14   : > { %v216_v0 = vld [vmem:[%s185_s10] sm:$0xff] (%p35_p5)  ;;  %v218_v1 = vld [vmem:[%s185_s10 + $0x18] sm:$0xff] (%p35_p5) }
  0x15   : > { %217 = vst [vmem:[%s182_s11] sm:$0xff] (%p35_p5), %v216_v0 }
  0x16   : > { %219 = vst [vmem:[%s182_s11 + $0x8] sm:$0xff] %v218_v1 }
  0x17 PF: > { %p944_p10 = scmp.ge.s32.totalorder %s1132_s21, 1  ;;  %p224_p11 = scmp.lt.s32.totalorder %s1132_s21, 4 }
  0x19   : > { %p225_p12 = pnand %p944_p10, %p224_p11 }
  0x1a   : > { %s1234_s23 = sand.u32 (!%p225_p12), 1, %s1124_s19   ;;  %p1003_p13 = scmp.ne.s32.totalorder (!%p225_p12), %s1190_s22, 0 }
  0x1b   : > { %228 = sbr.rel (%p225_p12) target bundleno = 445 (0x1bd), region = 66  ;;  %s945_s25 = sshll.u32 (!%p225_p12), %s1234_s23, 4 }
  0x1c   : > { %s233_s26 = scalar_lea.vmem (!%p225_p12), [#allocation2], %s945_s25  ;;  %s946_s17 = sshll.u32 (!%p225_p12), %s1234_s23, 8 }
  0x1d   : > { %s1323_s25 = scalar_lea.vmem (!%p225_p12), [#allocation3], %s946_s17 }
  0x20   : > { %v283_v2 = vld [vmem:[%s1873_s2 + $0x20] sm:$0xff]  ;;  %v281_v3 = vld [vmem:[%s1873_s2 + $0x10] sm:$0xff]  ;;  %v1134_v5 = vmov 0   ;;  %v1019_v7 = vld [vmem:[%s233_s26 + $0x4] sm:$0xf0]  ;;  %vm425_vm0 = vcmask 130048  }
  0x21   : > { %v279_v4 = vld [vmem:[%s1873_s2] sm:$0xff]  ;;  %1069 = vset.pattern.permute.xlu2 %v1134_v5  ;;  %1068 = vset.pattern.permute.xlu1 %v1134_v5  ;;  %v983_v10 = vld [vmem:[%s233_s26 + $0x8] sm:$0xf0]  ;;  %v285_v19 = vld [vmem:[%s1873_s2 + $0x30] sm:$0xff] }
  0x22   : > { %1067 = vset.pattern.permute.xlu0 %v1134_v5  ;;  %317 = vperm.xlu2 %1069, %v283_v2   ;;  %v981_v6 = vld [vmem:[%s233_s26] sm:$0xf]  ;;  %v1018_v8 = vld [vmem:[%s233_s26 + $0x4] sm:$0xf]  ;;  %v284_v14 = vld [vmem:[%s1873_s2 + $0x28] sm:$0xff] }
  0x23   : > { %307 = vperm.xlu1 %1068, %v281_v3   ;;  %297 = vperm.xlu0 %1067, %v279_v4   ;;  %v982_v9 = vor.u32 %v1019_v7, %v981_v6  ;;  %v986_v11 = vor.u32 %v1018_v8, %v983_v10  ;;  %v1010_v12 = vld [vmem:[%s1872_s1] sm:$0xff]  ;;  %v282_v15 = vld [vmem:[%s1873_s2 + $0x18] sm:$0xff]  ;;  %v280_v16 = vld [vmem:[%s1873_s2 + $0x8] sm:$0xff] }
  0x24   : > { %v1014_v13 = vld [vmem:[%s1872_s1 + $0x20] sm:$0xff]  ;;  %v286_v18 = vld [vmem:[%s1873_s2 + $0x38] sm:$0xff]  ;;  %v1011_v20 = vld [vmem:[%s1872_s1 + $0x8] sm:$0xff] }
  0x25   : > { %457 = vmatpush.bf16.msra.mxu0 %v982_v9  ;;  %1021 = vmatpush.bf16.msra.mxu2 %v982_v9  ;;  %v287_v17 = vld [vmem:[%s1873_s2 + $0x40] sm:$0xff]  ;;  %v1015_v21 = vld [vmem:[%s1872_s1 + $0x28] sm:$0xff]  ;;  %v290_v22 = vld [vmem:[%s1873_s2 + $0x58] sm:$0xff] }
  0x26   : > { %506 = vmatpush.bf16.msra.mxu1 %v986_v11  ;;  %1022 = vmatpush.bf16.msra.mxu3 %v986_v11  ;;  %v289_v23 = vld [vmem:[%s1873_s2 + $0x50] sm:$0xff]  ;;  %v288_v24 = vld [vmem:[%s1873_s2 + $0x48] sm:$0xff]  ;;  %v291_v27 = vld [vmem:[%s1873_s2 + $0x60] sm:$0xff] }
  0x27   : > { %v293_v25 = vld [vmem:[%s1873_s2 + $0x70] sm:$0xff]  ;;  %v292_v26 = vld [vmem:[%s1873_s2 + $0x68] sm:$0xff]  ;;  %v294_v30 = vld [vmem:[%s1873_s2 + $0x78] sm:$0xff] }
  0x28   : > { %987 = vmatmul.msk.bf16.vlgmr.msra.gmra.mxu0 %vm425_vm0, %v1010_v12  ;;  %991 = vmatmul.msk.bf16.vlgmr.msra.gmra.mxu2 %vm425_vm0, %v1014_v13  ;;  %v1012_v28 = vld [vmem:[%s1872_s1 + $0x10] sm:$0xff]  ;;  %v1013_v31 = vld [vmem:[%s1872_s1 + $0x18] sm:$0xff] }
  0x29   : > { %995 = vmatmul.msk.bf16.vlgmr.msra.gmra.mxu1 %vm425_vm0, %v1010_v12  ;;  %999 = vmatmul.msk.bf16.vlgmr.msra.gmra.mxu3 %vm425_vm0, %v1014_v13  ;;  %v1016_v29 = vld [vmem:[%s1872_s1 + $0x30] sm:$0xff]  ;;  %v1017_v32 = vld [vmem:[%s1872_s1 + $0x38] sm:$0xff] }
  0x2a   : > { %322 = vperm.xlu2 %1069, %v284_v14  }
  0x2b   : > { %312 = vperm.xlu1 %1068, %v282_v15   ;;  %302 = vperm.xlu0 %1067, %v280_v16  }
  0x32   : > { %337 = vperm.xlu2 %1069, %v287_v17  }
  0x33   : > { %332 = vperm.xlu1 %1068, %v286_v18   ;;  %327 = vperm.xlu0 %1067, %v285_v19  }
  0x38   : > { %988 = vmatmul.msk.bf16.gmra.mxu0 %vm425_vm0, %v1011_v20  ;;  %992 = vmatmul.msk.bf16.gmra.mxu2 %vm425_vm0, %v1015_v21 }
  0x39   : > { %996 = vmatmul.msk.bf16.gmra.mxu1 %vm425_vm0, %v1011_v20  ;;  %1000 = vmatmul.msk.bf16.gmra.mxu3 %vm425_vm0, %v1015_v21 }
  0x3a   : > { %352 = vperm.xlu2 %1069, %v290_v22  }
  0x3b   : > { %347 = vperm.xlu1 %1068, %v289_v23   ;;  %342 = vperm.xlu0 %1067, %v288_v24  }
  0x42   : > { %367 = vperm.xlu2 %1069, %v293_v25  }
  0x43   : > { %362 = vperm.xlu1 %1068, %v292_v26   ;;  %357 = vperm.xlu0 %1067, %v291_v27  }
  0x48   : > { %989 = vmatmul.msk.bf16.gmra.mxu0 %vm425_vm0, %v1012_v28  ;;  %993 = vmatmul.msk.bf16.gmra.mxu2 %vm425_vm0, %v1016_v29 }
  0x49   : > { %997 = vmatmul.msk.bf16.gmra.mxu1 %vm425_vm0, %v1012_v28  ;;  %1001 = vmatmul.msk.bf16.gmra.mxu3 %vm425_vm0, %v1016_v29 }
  0x4b   : > { %372 = vperm.xlu0 %1067, %v294_v30  }
  0x58   : > { %990 = vmatmul.msk.bf16.gmra.mxu0 %vm425_vm0, %v1013_v31  ;;  %994 = vmatmul.msk.bf16.gmra.mxu2 %vm425_vm0, %v1017_v32 }
  0x59   : > { %998 = vmatmul.msk.bf16.gmra.mxu1 %vm425_vm0, %v1013_v31  ;;  %1002 = vmatmul.msk.bf16.gmra.mxu3 %vm425_vm0, %v1017_v32 }
  0x7c   : > { %v1316_v34 = vpop.permute.xlu2 %317 }
  0x84   : > { %v1318_v37 = vpop.permute.xlu2 %322 }
  0x8c   : > { %v338_v45 = vpop.permute.xlu2 %337 }
  0x94   : > { %v353_v26 = vpop.permute.xlu2 %352 }
  0x95   : > { %v298_v33 = vpop.permute.xlu0 %297  ;;  %v308_v35 = vpop.permute.xlu1 %307 }
  0x9d   : > { %v303_v36 = vpop.permute.xlu0 %302  ;;  %v1321_v41 = vpop.permute.xlu1 %312 }
  0xa5   : > { %v459_v38 = vpop.f32.mrf.mxu0  ;;  %v1326_v43 = vpop.permute.xlu0 %327 }
  0xa6   : > { %v460_v39 = vadd.f32 %v459_v38, %v298_v33  ;;  %v508_v40 = vpop.f32.mrf.mxu1  ;;  %v1332_v59 = vpop.permute.xlu1 %332 }
  0xa7   : > { %v509_v42 = vadd.f32 %v508_v40, %v298_v33 }
  0xa8   : > { %548 = vst [vmem:[%s1323_s25] sm:$0xff] %v460_v39  ;;  %v628_v51 = vmul.f32 %v460_v39, %v460_v39 }
  0xa9   : > { %549 = vst [vmem:[%s1323_s25 + $0x8] sm:$0xff] %v509_v42  ;;  %v580_v44 = vadd.f32 %v509_v42, %v460_v39  ;;  %v629_v52 = vmul.f32 %v509_v42, %v509_v42 }
  0xab   : > { %581 = vadd.xlane.f32.xlu1 %v580_v44  ;;  %v479_v46 = vpop.f32.mrf.mxu2  ;;  %v660_v61 = vadd.f32 %v629_v52, %v628_v51 }
  0xac   : > { %v480_v47 = vadd.f32 %v479_v46, %v338_v45  ;;  %v528_v48 = vpop.f32.mrf.mxu3 }
  0xad   : > { %v529_v49 = vadd.f32 %v528_v48, %v338_v45  ;;  %v461_v50 = vpop.f32.mrf.mxu0  ;;  %v343_v62 = vpop.permute.xlu0 %342 }
  0xae   : > { %564 = vst [vmem:[%s1323_s25 + $0x80] sm:$0xff] %v480_v47  ;;  %v462_v53 = vadd.f32 %v461_v50, %v303_v36  ;;  %v510_v54 = vpop.f32.mrf.mxu1  ;;  %v644_v55 = vmul.f32 %v480_v47, %v480_v47  ;;  %v348_v12 = vpop.permute.xlu1 %347 }
  0xaf   : > { %565 = vst [vmem:[%s1323_s25 + $0x88] sm:$0xff] %v529_v49  ;;  %v511_v56 = vadd.f32 %v510_v54, %v303_v36  ;;  %v604_v57 = vadd.f32 %v529_v49, %v480_v47  ;;  %v645_v58 = vmul.f32 %v529_v49, %v529_v49 }
  0xb0   : > { %550 = vst [vmem:[%s1323_s25 + $0x10] sm:$0xff] %v462_v53  ;;  %v630_v14 = vmul.f32 %v462_v53, %v462_v53 }
  0xb1   : > { %551 = vst [vmem:[%s1323_s25 + $0x18] sm:$0xff] %v511_v56  ;;  %605 = vadd.xlane.f32.xlu2 %v604_v57  ;;  %v684_v60 = vadd.f32 %v645_v58, %v644_v55  ;;  %v583_v8 = vadd.f32 %v511_v56, %v462_v53  ;;  %v631_v15 = vmul.f32 %v511_v56, %v511_v56 }
  0xb3   : > { %685 = vadd.xlane.f32.xlu0 %v684_v60  ;;  %661 = vadd.xlane.f32.xlu1 %v660_v61  ;;  %v481_v63 = vpop.f32.mrf.mxu2  ;;  %v663_v23 = vadd.f32 %v631_v15, %v630_v14 }
  0xb4   : > { %v482_v0 = vadd.f32 %v481_v63, %v343_v62  ;;  %v530_v1 = vpop.f32.mrf.mxu3 }
  0xb5   : > { %v531_v2 = vadd.f32 %v530_v1, %v343_v62  ;;  %v464_v3 = vpop.f32.mrf.mxu0  ;;  %v358_v45 = vpop.permute.xlu0 %357 }
  0xb6   : > { %566 = vst [vmem:[%s1323_s25 + $0x90] sm:$0xff] %v482_v0  ;;  %v465_v4 = vadd.f32 %v464_v3, %v308_v35  ;;  %v513_v5 = vpop.f32.mrf.mxu1  ;;  %v646_v6 = vmul.f32 %v482_v0, %v482_v0  ;;  %v363_v61 = vpop.permute.xlu1 %362 }
  0xb7   : > { %567 = vst [vmem:[%s1323_s25 + $0x98] sm:$0xff] %v531_v2  ;;  %v514_v7 = vadd.f32 %v513_v5, %v308_v35  ;;  %v647_v9 = vmul.f32 %v531_v2, %v531_v2  ;;  %v607_v10 = vadd.f32 %v531_v2, %v482_v0 }
  0xb8   : > { %552 = vst [vmem:[%s1323_s25 + $0x20] sm:$0xff] %v465_v4  ;;  %v632_v30 = vmul.f32 %v465_v4, %v465_v4 }
  0xb9   : > { %553 = vst [vmem:[%s1323_s25 + $0x28] sm:$0xff] %v514_v7  ;;  %584 = vadd.xlane.f32.xlu2 %v583_v8  ;;  %v687_v11 = vadd.f32 %v647_v9, %v646_v6  ;;  %v586_v24 = vadd.f32 %v514_v7, %v465_v4  ;;  %v633_v33 = vmul.f32 %v514_v7, %v514_v7 }
  0xbb   : > { %608 = vadd.xlane.f32.xlu0 %v607_v10  ;;  %688 = vadd.xlane.f32.xlu1 %v687_v11  ;;  %v484_v13 = vpop.f32.mrf.mxu2  ;;  %v666_v42 = vadd.f32 %v633_v33, %v632_v30  ;;  %v368_v10 = vpop.permute.xlu2 %367 }
  0xbc   : > { %v485_v16 = vadd.f32 %v484_v13, %v348_v12  ;;  %v533_v17 = vpop.f32.mrf.mxu3 }
  0xbd   : > { %v534_v18 = vadd.f32 %v533_v17, %v348_v12  ;;  %v466_v19 = vpop.f32.mrf.mxu0 }
  0xbe   : > { %568 = vst [vmem:[%s1323_s25 + $0xa0] sm:$0xff] %v485_v16  ;;  %v467_v20 = vadd.f32 %v466_v19, %v1321_v41  ;;  %v515_v21 = vpop.f32.mrf.mxu1  ;;  %v648_v47 = vmul.f32 %v485_v16, %v485_v16 }
  0xbf   : > { %569 = vst [vmem:[%s1323_s25 + $0xa8] sm:$0xff] %v534_v18  ;;  %v516_v22 = vadd.f32 %v515_v21, %v1321_v41  ;;  %v610_v25 = vadd.f32 %v534_v18, %v485_v16  ;;  %v649_v48 = vmul.f32 %v534_v18, %v534_v18 }
  0xc0   : > { %554 = vst [vmem:[%s1323_s25 + $0x30] sm:$0xff] %v467_v20  ;;  %v634_v35 = vmul.f32 %v467_v20, %v467_v20 }
  0xc1   : > { %555 = vst [vmem:[%s1323_s25 + $0x38] sm:$0xff] %v516_v22  ;;  %664 = vadd.xlane.f32.xlu2 %v663_v23  ;;  %v635_v36 = vmul.f32 %v516_v22, %v516_v22  ;;  %v589_v41 = vadd.f32 %v516_v22, %v467_v20  ;;  %v690_v57 = vadd.f32 %v649_v48, %v648_v47 }
  0xc3   : > { %587 = vadd.xlane.f32.xlu0 %v586_v24  ;;  %611 = vadd.xlane.f32.xlu1 %v610_v25  ;;  %v486_v27 = vpop.f32.mrf.mxu2  ;;  %v669_v44 = vadd.f32 %v635_v36, %v634_v35  ;;  %v373_v25 = vpop.permute.xlu0 %372 }
  0xc4   : > { %v487_v28 = vadd.f32 %v486_v27, %v353_v26  ;;  %v535_v29 = vpop.f32.mrf.mxu3 }
  0xc5   : > { %v536_v31 = vadd.f32 %v535_v29, %v353_v26  ;;  %v469_v32 = vpop.f32.mrf.mxu0 }
  0xc6   : > { %570 = vst [vmem:[%s1323_s25 + $0xb0] sm:$0xff] %v487_v28  ;;  %v470_v38 = vadd.f32 %v469_v32, %v1316_v34  ;;  %v518_v39 = vpop.f32.mrf.mxu1  ;;  %v650_v52 = vmul.f32 %v487_v28, %v487_v28 }
  0xc7   : > { %571 = vst [vmem:[%s1323_s25 + $0xb8] sm:$0xff] %v536_v31  ;;  %v519_v40 = vadd.f32 %v518_v39, %v1316_v34  ;;  %v651_v53 = vmul.f32 %v536_v31, %v536_v31  ;;  %v613_v7 = vadd.f32 %v536_v31, %v487_v28 }
  0xc8   : > { %556 = vst [vmem:[%s1323_s25 + $0x40] sm:$0xff] %v470_v38  ;;  %v636_v12 = vmul.f32 %v470_v38, %v470_v38 }
  0xc9   : > { %557 = vst [vmem:[%s1323_s25 + $0x48] sm:$0xff] %v519_v40  ;;  %590 = vadd.xlane.f32.xlu2 %v589_v41  ;;  %v693_v58 = vadd.f32 %v651_v53, %v650_v52  ;;  %v592_v60 = vadd.f32 %v519_v40, %v470_v38  ;;  %v637_v13 = vmul.f32 %v519_v40, %v519_v40 }
  0xcb   : > { %667 = vadd.xlane.f32.xlu0 %v666_v42  ;;  %670 = vadd.xlane.f32.xlu1 %v669_v44  ;;  %v489_v46 = vpop.f32.mrf.mxu2  ;;  %v672_v22 = vadd.f32 %v637_v13, %v636_v12 }
  0xcc   : > { %v490_v49 = vadd.f32 %v489_v46, %v358_v45  ;;  %v538_v50 = vpop.f32.mrf.mxu3 }
  0xcd   : > { %v539_v51 = vadd.f32 %v538_v50, %v358_v45  ;;  %v471_v34 = vpop.f32.mrf.mxu0 }
  0xce   : > { %572 = vst [vmem:[%s1323_s25 + $0xc0] sm:$0xff] %v490_v49  ;;  %v1353_v54 = vadd.f32 %v471_v34, %v1318_v37  ;;  %v520_v55 = vpop.f32.mrf.mxu1  ;;  %v652_v2 = vmul.f32 %v490_v49, %v490_v49 }
  0xcf   : > { %573 = vst [vmem:[%s1323_s25 + $0xc8] sm:$0xff] %v539_v51  ;;  %v521_v56 = vadd.f32 %v520_v55, %v1318_v37  ;;  %v653_v3 = vmul.f32 %v539_v51, %v539_v51  ;;  %v616_v8 = vadd.f32 %v539_v51, %v490_v49 }
  0xd0   : > { %558 = vst [vmem:[%s1323_s25 + $0x50] sm:$0xff] %v1353_v54  ;;  %v638_v17 = vmul.f32 %v1353_v54, %v1353_v54 }
  0xd1   : > { %559 = vst [vmem:[%s1323_s25 + $0x58] sm:$0xff] %v521_v56  ;;  %691 = vadd.xlane.f32.xlu2 %v690_v57  ;;  %v696_v9 = vadd.f32 %v653_v3, %v652_v2  ;;  %v639_v18 = vmul.f32 %v521_v56, %v521_v56 }
  0xd3   : > { %694 = vadd.xlane.f32.xlu0 %v693_v58  ;;  %593 = vadd.xlane.f32.xlu1 %v592_v60  ;;  %v491_v62 = vpop.f32.mrf.mxu2  ;;  %v675_v23 = vadd.f32 %v639_v18, %v638_v17 }
  0xd4   : > { %v1360_v63 = vadd.f32 %v491_v62, %v363_v61  ;;  %v540_v0 = vpop.f32.mrf.mxu3 }
  0xd5   : > { %v1362_v1 = vadd.f32 %v540_v0, %v363_v61  ;;  %v474_v37 = vpop.f32.mrf.mxu0 }
  0xd6   : > { %574 = vst [vmem:[%s1323_s25 + $0xd0] sm:$0xff] %v1360_v63  ;;  %v475_v4 = vadd.f32 %v474_v37, %v1326_v43  ;;  %v523_v5 = vpop.f32.mrf.mxu1  ;;  %v654_v49 = vmul.f32 %v1360_v63, %v1360_v63 }
  0xd7   : > { %575 = vst [vmem:[%s1323_s25 + $0xd8] sm:$0xff] %v1362_v1  ;;  %v524_v6 = vadd.f32 %v523_v5, %v1326_v43  ;;  %v619_v24 = vadd.f32 %v1362_v1, %v1360_v63  ;;  %v655_v50 = vmul.f32 %v1362_v1, %v1362_v1 }
  0xd8   : > { %560 = vst [vmem:[%s1323_s25 + $0x60] sm:$0xff] %v475_v4  ;;  %v640_v30 = vmul.f32 %v475_v4, %v475_v4 }
  0xd9   : > { %561 = vst [vmem:[%s1323_s25 + $0x68] sm:$0xff] %v524_v6  ;;  %614 = vadd.xlane.f32.xlu2 %v613_v7  ;;  %v641_v31 = vmul.f32 %v524_v6, %v524_v6  ;;  %v598_v32 = vadd.f32 %v524_v6, %v475_v4  ;;  %v699_v51 = vadd.f32 %v655_v50, %v654_v49 }
  0xdb   : > { %617 = vadd.xlane.f32.xlu0 %v616_v8  ;;  %697 = vadd.xlane.f32.xlu1 %v696_v9  ;;  %v494_v11 = vpop.f32.mrf.mxu2  ;;  %v678_v33 = vadd.f32 %v641_v31, %v640_v30 }
  0xdc   : > { %v495_v14 = vadd.f32 %v494_v11, %v368_v10  ;;  %v543_v15 = vpop.f32.mrf.mxu3 }
  0xdd   : > { %v544_v16 = vadd.f32 %v543_v15, %v368_v10  ;;  %v476_v43 = vpop.f32.mrf.mxu0 }
  0xde   : > { %576 = vst [vmem:[%s1323_s25 + $0xe0] sm:$0xff] %v495_v14  ;;  %v477_v19 = vadd.f32 %v476_v43, %v1332_v59  ;;  %v525_v20 = vpop.f32.mrf.mxu1  ;;  %v656_v41 = vmul.f32 %v495_v14, %v495_v14 }
  0xdf   : > { %577 = vst [vmem:[%s1323_s25 + $0xe8] sm:$0xff] %v544_v16  ;;  %v526_v21 = vadd.f32 %v525_v20, %v1332_v59  ;;  %v595_v59 = vadd.f32 %v521_v56, %v1353_v54  ;;  %v622_v35 = vadd.f32 %v544_v16, %v495_v14  ;;  %v657_v42 = vmul.f32 %v544_v16, %v544_v16 }
  0xe0   : > { %562 = vst [vmem:[%s1323_s25 + $0x70] sm:$0xff] %v477_v19  ;;  %v642_v39 = vmul.f32 %v477_v19, %v477_v19 }
  0xe1   : > { %563 = vst [vmem:[%s1323_s25 + $0x78] sm:$0xff] %v526_v21  ;;  %673 = vadd.xlane.f32.xlu2 %v672_v22  ;;  %v601_v38 = vadd.f32 %v526_v21, %v477_v19  ;;  %v643_v40 = vmul.f32 %v526_v21, %v526_v21  ;;  %v702_v47 = vadd.f32 %v657_v42, %v656_v41 }
  0xe3   : > { %676 = vadd.xlane.f32.xlu0 %v675_v23  ;;  %620 = vadd.xlane.f32.xlu1 %v619_v24  ;;  %v496_v26 = vpop.f32.mrf.mxu2  ;;  %v681_v46 = vadd.f32 %v643_v40, %v642_v39 }
  0xe4   : > { %v497_v27 = vadd.f32 %v496_v26, %v373_v25  ;;  %v545_v28 = vpop.f32.mrf.mxu3 }
  0xe5   : > { %v546_v29 = vadd.f32 %v545_v28, %v373_v25 }
  0xe6   : > { %578 = vst [vmem:[%s1323_s25 + $0xf0] sm:$0xff] %v497_v27  ;;  %v658_v44 = vmul.f32 %v497_v27, %v497_v27 }
  0xe7   : > { %579 = vst [vmem:[%s1323_s25 + $0xf8] sm:$0xff] %v546_v29  ;;  %v625_v36 = vadd.f32 %v546_v29, %v497_v27  ;;  %v659_v45 = vmul.f32 %v546_v29, %v546_v29 }
  0xe9   : > { %596 = vadd.xlane.f32.xlu2 %v595_v59  ;;  %v705_v48 = vadd.f32 %v659_v45, %v658_v44 }
  0xeb   : > { %599 = vadd.xlane.f32.xlu0 %v598_v32  ;;  %679 = vadd.xlane.f32.xlu1 %v678_v33 }
  0xf1   : > { %623 = vadd.xlane.f32.xlu2 %v622_v35 }
  0xf3   : > { %626 = vadd.xlane.f32.xlu0 %v625_v36  ;;  %602 = vadd.xlane.f32.xlu1 %v601_v38 }
  0xf9   : > { %682 = vadd.xlane.f32.xlu2 %v681_v46 }
  0xfb   : > { %703 = vadd.xlane.f32.xlu0 %v702_v47  ;;  %706 = vadd.xlane.f32.xlu1 %v705_v48 }
 0x101   : > { %700 = vadd.xlane.f32.xlu2 %v699_v51 }
 0x11e   : > { %v1389_v34 = vpop.xlane.xlu1 %581 }
 0x124   : > { %v1391_v52 = vpop.xlane.xlu2 %605 }
 0x126   : > { %v1393_v53 = vpop.xlane.xlu0 %685  ;;  %v1395_v54 = vpop.xlane.xlu1 %661 }
 0x12c   : > { %v1397_v55 = vpop.xlane.xlu2 %584 }
 0x12e   : > { %v1399_v56 = vpop.xlane.xlu0 %608  ;;  %v1401_v57 = vpop.xlane.xlu1 %688 }
 0x134   : > { %v1403_v58 = vpop.xlane.xlu2 %664 }
 0x136   : > { %v1405_v60 = vpop.xlane.xlu0 %587  ;;  %v1407_v61 = vpop.xlane.xlu1 %611 }
 0x13c   : > { %v1409_v62 = vpop.xlane.xlu2 %590 }
 0x13e   : > { %v1411_v63 = vpop.xlane.xlu0 %667  ;;  %v1413_v0 = vpop.xlane.xlu1 %670 }
 0x144   : > { %v1415_v1 = vpop.xlane.xlu2 %691 }
 0x146   : > { %v1417_v37 = vpop.xlane.xlu0 %694  ;;  %v1419_v2 = vpop.xlane.xlu1 %593 }
 0x14c   : > { %v1421_v3 = vpop.xlane.xlu2 %614 }
 0x14e   : > { %v1423_v4 = vpop.xlane.xlu0 %617  ;;  %v1425_v5 = vpop.xlane.xlu1 %697 }
 0x154   : > { %v1427_v6 = vpop.xlane.xlu2 %673 }
 0x156   : > { %v1429_v7 = vpop.xlane.xlu0 %676  ;;  %v1431_v8 = vpop.xlane.xlu1 %620 }
 0x15c   : > { %v1433_v9 = vpop.xlane.xlu2 %596 }
 0x15e   : > { %v1435_v10 = vpop.xlane.xlu0 %599  ;;  %v1437_v11 = vpop.xlane.xlu1 %679 }
 0x164   : > { %v1439_v12 = vpop.xlane.xlu2 %623 }
 0x166   : > { %v1441_v13 = vpop.xlane.xlu0 %626  ;;  %v1443_v14 = vpop.xlane.xlu1 %602 }
 0x16c   : > { %v1445_v15 = vpop.xlane.xlu2 %682 }
 0x16e   : > { %v1447_v16 = vpop.xlane.xlu0 %703  ;;  %v1449_v43 = vpop.xlane.xlu1 %706 }
 0x170   : > { %711 = sbr.rel (%p1003_p13) target bundleno = 406 (0x196), region = 74 }
 0x174   : > { %v1451_v17 = vpop.xlane.xlu2 %700 }
 0x175   : > { %vm712_vm1 = vcmask 7168   ;;  %v1135_v18 = vmov 0.0  }
 0x176   : > { %713 = vst.msk [vmem:[%s1875_s4] sm:$0xff] %vm712_vm1, %v1135_v18 }
 0x177   : > { %714 = vst.msk [vmem:[%s1875_s4 + $0x8] sm:$0xff] %vm712_vm1, %v1135_v18 }
 0x178   : > { %715 = vst.msk [vmem:[%s1875_s4 + $0x10] sm:$0xff] %vm712_vm1, %v1135_v18 }
 0x179   : > { %716 = vst.msk [vmem:[%s1875_s4 + $0x18] sm:$0xff] %vm712_vm1, %v1135_v18 }
 0x17a   : > { %717 = vst.msk [vmem:[%s1875_s4 + $0x20] sm:$0xff] %vm712_vm1, %v1135_v18 }
 0x17b   : > { %718 = vst.msk [vmem:[%s1875_s4 + $0x28] sm:$0xff] %vm712_vm1, %v1135_v18 }
 0x17c   : > { %719 = vst.msk [vmem:[%s1875_s4 + $0x30] sm:$0xff] %vm712_vm1, %v1135_v18 }
 0x17d   : > { %720 = vst.msk [vmem:[%s1875_s4 + $0x38] sm:$0xff] %vm712_vm1, %v1135_v18 }
 0x17e   : > { %721 = vst.msk [vmem:[%s1875_s4 + $0x40] sm:$0xff] %vm712_vm1, %v1135_v18 }
 0x17f   : > { %722 = vst.msk [vmem:[%s1875_s4 + $0x48] sm:$0xff] %vm712_vm1, %v1135_v18 }
 0x180   : > { %723 = vst.msk [vmem:[%s1875_s4 + $0x50] sm:$0xff] %vm712_vm1, %v1135_v18 }
 0x181   : > { %724 = vst.msk [vmem:[%s1875_s4 + $0x58] sm:$0xff] %vm712_vm1, %v1135_v18 }
 0x182   : > { %725 = vst.msk [vmem:[%s1875_s4 + $0x60] sm:$0xff] %vm712_vm1, %v1135_v18 }
 0x183   : > { %726 = vst.msk [vmem:[%s1875_s4 + $0x68] sm:$0xff] %vm712_vm1, %v1135_v18 }
 0x184   : > { %727 = vst.msk [vmem:[%s1875_s4 + $0x70] sm:$0xff] %vm712_vm1, %v1135_v18 }
 0x185   : > { %728 = vst.msk [vmem:[%s1875_s4 + $0x78] sm:$0xff] %vm712_vm1, %v1135_v18 }
 0x186   : > { %729 = vst.msk [vmem:[%s1876_s5] sm:$0xff] %vm712_vm1, %v1135_v18 }
 0x187   : > { %730 = vst.msk [vmem:[%s1876_s5 + $0x8] sm:$0xff] %vm712_vm1, %v1135_v18 }
 0x188   : > { %731 = vst.msk [vmem:[%s1876_s5 + $0x10] sm:$0xff] %vm712_vm1, %v1135_v18 }
 0x189   : > { %732 = vst.msk [vmem:[%s1876_s5 + $0x18] sm:$0xff] %vm712_vm1, %v1135_v18 }
 0x18a   : > { %733 = vst.msk [vmem:[%s1876_s5 + $0x20] sm:$0xff] %vm712_vm1, %v1135_v18 }
 0x18b   : > { %734 = vst.msk [vmem:[%s1876_s5 + $0x28] sm:$0xff] %vm712_vm1, %v1135_v18 }
 0x18c   : > { %735 = vst.msk [vmem:[%s1876_s5 + $0x30] sm:$0xff] %vm712_vm1, %v1135_v18 }
 0x18d   : > { %736 = vst.msk [vmem:[%s1876_s5 + $0x38] sm:$0xff] %vm712_vm1, %v1135_v18 }
 0x18e   : > { %737 = vst.msk [vmem:[%s1876_s5 + $0x40] sm:$0xff] %vm712_vm1, %v1135_v18 }
 0x18f   : > { %738 = vst.msk [vmem:[%s1876_s5 + $0x48] sm:$0xff] %vm712_vm1, %v1135_v18 }
 0x190   : > { %739 = vst.msk [vmem:[%s1876_s5 + $0x50] sm:$0xff] %vm712_vm1, %v1135_v18 }
 0x191   : > { %740 = vst.msk [vmem:[%s1876_s5 + $0x58] sm:$0xff] %vm712_vm1, %v1135_v18 }
 0x192   : > { %741 = vst.msk [vmem:[%s1876_s5 + $0x60] sm:$0xff] %vm712_vm1, %v1135_v18 }
 0x193   : > { %742 = vst.msk [vmem:[%s1876_s5 + $0x68] sm:$0xff] %vm712_vm1, %v1135_v18 }
 0x194   : > { %743 = vst.msk [vmem:[%s1876_s5 + $0x70] sm:$0xff] %vm712_vm1, %v1135_v18 }
 0x195   : > { %744 = vst.msk [vmem:[%s1876_s5 + $0x78] sm:$0xff] %vm712_vm1, %v1135_v18 }
 0x196 PF: > { %v745_v19 = vld [vmem:[%s1875_s4] sm:$0xff]  ;;  %vm777_vm2 = vcmask 7168   ;;  %v746_v20 = vld [vmem:[%s1875_s4 + $0x8] sm:$0xff]  ;;  %v747_v21 = vld [vmem:[%s1875_s4 + $0x10] sm:$0xff]  ;;  %s1020_s8 = sshll.u32 %s1190_s22, 4  ;;  %s855_s16 = sshll.u32 %s1323_s25, 4  ;;  %s856_s16 = int_to_ptr.vmem [resolvable:$true] %s855_s16 }
 0x197   : > { %v761_v22 = vadd.f32 %v745_v19, %v1389_v34  ;;  %v762_v23 = vadd.f32 %v746_v20, %v1397_v55  ;;  %v763_v24 = vadd.f32 %v747_v21, %v1405_v60  ;;  %v748_v25 = vld [vmem:[%s1875_s4 + $0x18] sm:$0xff]  ;;  %v749_v26 = vld [vmem:[%s1875_s4 + $0x20] sm:$0xff]  ;;  %v750_v27 = vld [vmem:[%s1875_s4 + $0x28] sm:$0xff]  ;;  %s854_s9 = scalar_lea.hbm %s1874_s3, %s1020_s8  ;;  %s843_s17 = scalar_lea.sflag [#allocation4], %s1234_s23 }
 0x198   : > { %v764_v28 = vadd.f32 %v748_v25, %v1409_v62  ;;  %v751_v29 = vld [vmem:[%s1875_s4 + $0x30] sm:$0xff]  ;;  %v765_v30 = vadd.f32 %v749_v26, %v1419_v2  ;;  %v752_v31 = vld [vmem:[%s1875_s4 + $0x38] sm:$0xff]  ;;  %v766_v59 = vadd.f32 %v750_v27, %v1433_v9  ;;  %v753_v32 = vld [vmem:[%s1875_s4 + $0x40] sm:$0xff]  ;;  %s857_s30 = sshll.u32 %s854_s9, 4  ;;  %s1090_s11 = scalar_lea.hbm %s1874_s3, 768  ;;  %s858_s30 = int_to_ptr.hbm [resolvable:$true] %s857_s30 }
 0x199   : > { %778 = vst.msk [vmem:[%s1875_s4] sm:$0xff] %vm777_vm2, %v761_v22  ;;  %v767_v33 = vadd.f32 %v751_v29, %v1435_v10  ;;  %v754_v35 = vld [vmem:[%s1875_s4 + $0x48] sm:$0xff]  ;;  %v768_v36 = vadd.f32 %v752_v31, %v1443_v14  ;;  %v755_v38 = vld [vmem:[%s1875_s4 + $0x50] sm:$0xff]  ;;  %v769_v39 = vadd.f32 %v753_v32, %v1391_v52  ;;  %v756_v40 = vld [vmem:[%s1875_s4 + $0x58] sm:$0xff]  ;;  %s1084_s26 = sshra.s32 %s858_s30, 4  ;;  %s1085_s26 = int_to_ptr.hbm [resolvable:$true] %s1084_s26 }
 0x19a   : > { %779 = vst.msk [vmem:[%s1875_s4 + $0x8] sm:$0xff] %vm777_vm2, %v762_v23  ;;  %v770_v41 = vadd.f32 %v754_v35, %v1399_v56  ;;  %v757_v42 = vld [vmem:[%s1875_s4 + $0x60] sm:$0xff]  ;;  %v771_v44 = vadd.f32 %v755_v38, %v1407_v61  ;;  %v758_v45 = vld [vmem:[%s1875_s4 + $0x68] sm:$0xff]  ;;  %v772_v46 = vadd.f32 %v756_v40, %v1421_v3  ;;  %v759_v47 = vld [vmem:[%s1875_s4 + $0x70] sm:$0xff]  ;;  %s1086_s6 = scalar_lea.hbm %s1085_s26, 256  ;;  %p1091_p3 = scmp.lt.s32.totalorder %s1085_s26, %s1874_s3 }
 0x19b   : > { %780 = vst.msk [vmem:[%s1875_s4 + $0x10] sm:$0xff] %vm777_vm2, %v763_v24  ;;  %v773_v48 = vadd.f32 %v757_v42, %v1423_v4  ;;  %v760_v49 = vld [vmem:[%s1875_s4 + $0x78] sm:$0xff]  ;;  %v774_v50 = vadd.f32 %v758_v45, %v1431_v8  ;;  %v794_v51 = vld [vmem:[%s1876_s5] sm:$0xff]  ;;  %v775_v34 = vadd.f32 %v759_v47, %v1439_v12  ;;  %v795_v52 = vld [vmem:[%s1876_s5 + $0x8] sm:$0xff]  ;;  %p1087_p0 = scmp.ne.s32.totalorder %s1085_s26, %s1086_s6  ;;  %p1092_p4 = scmp.lt.s32.totalorder %s1090_s11, %s1086_s6 }
 0x19c   : > { %781 = vst.msk [vmem:[%s1875_s4 + $0x18] sm:$0xff] %vm777_vm2, %v764_v28  ;;  %v776_v55 = vadd.f32 %v760_v49, %v1441_v13  ;;  %v796_v56 = vld [vmem:[%s1876_s5 + $0x10] sm:$0xff]  ;;  %v810_v60 = vadd.f32 %v794_v51, %v1395_v54  ;;  %v797_v61 = vld [vmem:[%s1876_s5 + $0x18] sm:$0xff]  ;;  %v811_v62 = vadd.f32 %v795_v52, %v1403_v58  ;;  %v798_v2 = vld [vmem:[%s1876_s5 + $0x20] sm:$0xff] }
 0x19d   : > { %782 = vst.msk [vmem:[%s1875_s4 + $0x20] sm:$0xff] %vm777_vm2, %v765_v30  ;;  %v812_v54 = vadd.f32 %v796_v56, %v1411_v63  ;;  %v799_v3 = vld [vmem:[%s1876_s5 + $0x28] sm:$0xff]  ;;  %v813_v58 = vadd.f32 %v797_v61, %v1413_v0  ;;  %v800_v4 = vld [vmem:[%s1876_s5 + $0x30] sm:$0xff]  ;;  %v814_v63 = vadd.f32 %v798_v2, %v1427_v6  ;;  %v801_v8 = vld [vmem:[%s1876_s5 + $0x38] sm:$0xff]  ;;  %p1088_p1 = pnand %p1087_p0, %p1208_p6  ;;  %p1093_p5 = por %p1092_p4, %p1091_p3 }
 0x19e   : > { %783 = vst.msk [vmem:[%s1875_s4 + $0x28] sm:$0xff] %vm777_vm2, %v766_v59  ;;  %v815_v0 = vadd.f32 %v799_v3, %v1429_v7  ;;  %v802_v9 = vld [vmem:[%s1876_s5 + $0x40] sm:$0xff]  ;;  %v816_v6 = vadd.f32 %v800_v4, %v1437_v11  ;;  %v803_v10 = vld [vmem:[%s1876_s5 + $0x48] sm:$0xff]  ;;  %v817_v7 = vadd.f32 %v801_v8, %v1445_v15  ;;  %v804_v12 = vld [vmem:[%s1876_s5 + $0x50] sm:$0xff] }
 0x19f   : > { %784 = vst.msk [vmem:[%s1875_s4 + $0x30] sm:$0xff] %vm777_vm2, %v767_v33  ;;  %v818_v11 = vadd.f32 %v802_v9, %v1393_v53  ;;  %v805_v13 = vld [vmem:[%s1876_s5 + $0x58] sm:$0xff]  ;;  %v819_v14 = vadd.f32 %v803_v10, %v1401_v57  ;;  %v806_v15 = vld [vmem:[%s1876_s5 + $0x60] sm:$0xff]  ;;  %v820_v53 = vadd.f32 %v804_v12, %v1415_v1  ;;  %v807_v18 = vld [vmem:[%s1876_s5 + $0x68] sm:$0xff]  ;;  %p1089_p2 = pneg %p1088_p1 }
 0x1a0   : > { %785 = vst.msk [vmem:[%s1875_s4 + $0x38] sm:$0xff] %vm777_vm2, %v768_v36  ;;  %v821_v57 = vadd.f32 %v805_v13, %v1417_v37  ;;  %v808_v19 = vld [vmem:[%s1876_s5 + $0x70] sm:$0xff]  ;;  %v822_v1 = vadd.f32 %v806_v15, %v1425_v5  ;;  %v809_v20 = vld [vmem:[%s1876_s5 + $0x78] sm:$0xff]  ;;  %v823_v37 = vadd.f32 %v807_v18, %v1451_v17 }
 0x1a1   : > { %786 = vst.msk [vmem:[%s1875_s4 + $0x40] sm:$0xff] %vm777_vm2, %v769_v39  ;;  %v824_v5 = vadd.f32 %v808_v19, %v1447_v16  ;;  %v825_v21 = vadd.f32 %v809_v20, %v1449_v43  ;;  %p1094_p7 = pnand %p1093_p5, %p1089_p2 }
 0x1a2   : > { %787 = vst.msk [vmem:[%s1875_s4 + $0x48] sm:$0xff] %vm777_vm2, %v770_v41 }
 0x1a3   : > { %788 = vst.msk [vmem:[%s1875_s4 + $0x50] sm:$0xff] %vm777_vm2, %v771_v44 }
 0x1a4   : > { %789 = vst.msk [vmem:[%s1875_s4 + $0x58] sm:$0xff] %vm777_vm2, %v772_v46 }
 0x1a5   : > { %790 = vst.msk [vmem:[%s1875_s4 + $0x60] sm:$0xff] %vm777_vm2, %v773_v48 }
 0x1a6   : > { %791 = vst.msk [vmem:[%s1875_s4 + $0x68] sm:$0xff] %vm777_vm2, %v774_v50 }
 0x1a7   : > { %792 = vst.msk [vmem:[%s1875_s4 + $0x70] sm:$0xff] %vm777_vm2, %v775_v34 }
 0x1a8   : > { %793 = vst.msk [vmem:[%s1875_s4 + $0x78] sm:$0xff] %vm777_vm2, %v776_v55 }
 0x1a9   : > { %826 = vst.msk [vmem:[%s1876_s5] sm:$0xff] %vm777_vm2, %v810_v60 }
 0x1aa   : > { %827 = vst.msk [vmem:[%s1876_s5 + $0x8] sm:$0xff] %vm777_vm2, %v811_v62 }
 0x1ab   : > { %828 = vst.msk [vmem:[%s1876_s5 + $0x10] sm:$0xff] %vm777_vm2, %v812_v54 }
 0x1ac   : > { %829 = vst.msk [vmem:[%s1876_s5 + $0x18] sm:$0xff] %vm777_vm2, %v813_v58 }
 0x1ad   : > { %830 = vst.msk [vmem:[%s1876_s5 + $0x20] sm:$0xff] %vm777_vm2, %v814_v63 }
 0x1ae   : > { %831 = vst.msk [vmem:[%s1876_s5 + $0x28] sm:$0xff] %vm777_vm2, %v815_v0 }
 0x1af   : > { %832 = vst.msk [vmem:[%s1876_s5 + $0x30] sm:$0xff] %vm777_vm2, %v816_v6 }
 0x1b0   : > { %833 = vst.msk [vmem:[%s1876_s5 + $0x38] sm:$0xff] %vm777_vm2, %v817_v7 }
 0x1b1   : > { %834 = vst.msk [vmem:[%s1876_s5 + $0x40] sm:$0xff] %vm777_vm2, %v818_v11 }
 0x1b2   : > { %835 = vst.msk [vmem:[%s1876_s5 + $0x48] sm:$0xff] %vm777_vm2, %v819_v14 }
 0x1b3   : > { %836 = vst.msk [vmem:[%s1876_s5 + $0x50] sm:$0xff] %vm777_vm2, %v820_v53 }
 0x1b4   : > { %837 = vst.msk [vmem:[%s1876_s5 + $0x58] sm:$0xff] %vm777_vm2, %v821_v57 }
 0x1b5   : > { %838 = vst.msk [vmem:[%s1876_s5 + $0x60] sm:$0xff] %vm777_vm2, %v822_v1 }
 0x1b6   : > { %839 = vst.msk [vmem:[%s1876_s5 + $0x68] sm:$0xff] %vm777_vm2, %v823_v37 }
 0x1b7   : > { %840 = vst.msk [vmem:[%s1876_s5 + $0x70] sm:$0xff] %vm777_vm2, %v824_v5 }
 0x1b8   : > { %841 = vst.msk [vmem:[%s1876_s5 + $0x78] sm:$0xff] %vm777_vm2, %v825_v21 }
 0x1b9   : > { %1097 = shalt.err (!%p1094_p7)
}
 0x1ba   : > { %s1136_s23 = smov 256   ;;  %s1137_s9 = smov 768  }
 0x1bb   : > { %s1138_s13 = smov 16  }
 0x1bc   : > { %1023 = dma.vmem_to_hbm [thread:$0]  (%p1208_p6), %s856_s16, 4096, %s858_s30, %s843_s17, %s1136_s23, %s1137_s9, %s1138_s13  }
 0x1bd PF: > { %p1029_p9 = scmp.ge.s32.totalorder %s1132_s21, 2  ;;  %s884_s14 = sand.u32 1, %s1120_s18  }
 0x1be   : > { %s885_s22 = scalar_lea.sflag [#allocation4], %s884_s14 }
 0x1bf   : > { %p1026_p10 = pnand %p1029_p9, %p1212_p8 }
 0x1c1   : > { %p1027_p11 = pneg %p1026_p10 }
 0x1c3   : > { %1115 = dma.done.wait (%p1027_p11), %s885_s22, 4096  }
 0x1c4   : > { %1117 = vsyncadd (%p1027_p11), %s885_s22, 4294963200  ;;  %p16_p12 = scmp.ge.s32.totalorder %s1194_s24, 5   ;;  %s1879_s18 = smov %s1124_s19 }
 0x1c5   : > { %s1880_s19 = smov %s1128_s20  ;;  %s1881_s20 = smov %s1206_s27 }
 0x1c6   : > { %s1882_s21 = smov %s1194_s24  ;;  %18 = sbr.rel (!%p16_p12) target bundleno = 3 (0x3), region = 130 }
 0x1cb   :  { %891 = vsyncpa [#allocation4], 1 }
 0x1cc   :  { %893 = vsyncpa [#allocation4 + $0x1], 1 }

</bundles_post_ra>
